<compile_context>
chip_gen: v5e
topology: v5e:2x2
jax: 0.10.0
libtpu: 0.0.40
codegen_flags: <defaults>
</compile_context>

<pallas_src>
import functools

import jax
import jax.numpy as jnp
from jax.experimental import pallas as pl
from jax.experimental.pallas import tpu as pltpu

# Model hyper-parameters (C51-style head), small shapes per the module.
IN_DIM = 16
HIDDEN = 32
OUT_DIM = 4
ATOM_SIZE = 51
BATCH = 2

LANE = 128
OUT_PAD = 128          # lane-dense q tile width
TB_CAP = 1024          # batch-tile cap (VMEM-safe on every generation)
NEG_INF = -1e30


def _round_up(n, m):
    return (n + m - 1) // m * m


def _c51_kernel(out_dim, atom_pad, hid_pad, x_ref, w1_ref, w2_ref, w3_ref,
                bias_ref, s_ref, q_ref):
    """Fused MLP trunk + per-action softmax + clamp + support-weighted sum."""
    b1 = bias_ref[0:1, :hid_pad]        # (1, 128)
    b2 = bias_ref[1:2, :hid_pad]        # (1, 128)
    b3 = bias_ref[2:3, :]               # (1, out_dim*atom_pad)

    # ---- MLP trunk: MXU matmuls (f32) + lane-dense VPU bias/ReLU ----
    h1 = jnp.maximum(
        jnp.dot(x_ref[...], w1_ref[...], preferred_element_type=jnp.float32) + b1,
        0.0)
    h2 = jnp.maximum(
        jnp.dot(h1, w2_ref[...], preferred_element_type=jnp.float32) + b2,
        0.0)
    logits = jnp.dot(h2, w3_ref[...], preferred_element_type=jnp.float32) + b3

    # ---- distributional head: per-action softmax on 2D lane-aligned slices ----
    dists = []
    for a in range(out_dim):            # static unrolled loop (out_dim == 4)
        la = logits[:, a * atom_pad:(a + 1) * atom_pad]       # (tb, 128)
        m = jnp.max(la, axis=-1, keepdims=True)
        e = jnp.exp(la - m)             # padded atoms: exp(-1e30 - m) == 0
        denom = jnp.sum(e, axis=-1, keepdims=True)
        d = e * pl.reciprocal(denom, approx=True)             # EUP reciprocal
        dists.append(jnp.maximum(d, 0.001))                   # clamp(min=0.001)
    dist = jnp.concatenate(dists, axis=-1)                    # (tb, out_dim*128)

    # Weighted atom sum as one MXU matmul with the block-diagonal support
    # matrix; padded atoms hit zero rows of S so the clamp floor adds nothing.
    # Output is a lane-dense (tb, 128) tile; wrapper slices [:, :out_dim].
    q_ref[...] = jnp.dot(dist, s_ref[...], preferred_element_type=jnp.float32)


@functools.partial(jax.jit, static_argnames=("block_b",))
def c51_forward(x, w1, b1, w2, b2, w3, b3, support, *, block_b=None):
    batch, in_dim = x.shape
    hidden = w1.shape[1]
    atoms = support.size
    out_dim = w3.shape[1] // atoms

    atom_pad = _round_up(atoms, LANE)            # 51 -> 128
    hid_pad = _round_up(hidden, LANE)            # 32 -> 128
    head_cols = out_dim * atom_pad               # 512
    f32 = jnp.float32

    # ---- parameter prep (zero-pad hidden, pad atoms with -inf bias) ----
    w1p = jnp.pad(w1.astype(f32), ((0, 0), (0, hid_pad - hidden)))
    w2p = jnp.pad(w2.astype(f32),
                  ((0, hid_pad - hidden), (0, hid_pad - hidden)))
    w3p = jnp.pad(w3.astype(f32).reshape(hidden, out_dim, atoms),
                  ((0, hid_pad - hidden), (0, 0), (0, atom_pad - atoms))
                  ).reshape(hid_pad, head_cols)
    b1p = jnp.pad(b1.astype(f32), (0, hid_pad - hidden))
    b2p = jnp.pad(b2.astype(f32), (0, hid_pad - hidden))
    b3p = jnp.pad(b3.astype(f32).reshape(out_dim, atoms),
                  ((0, 0), (0, atom_pad - atoms)),
                  constant_values=NEG_INF).reshape(1, head_cols)

    def row(v):
        v = v.reshape(1, -1)
        return jnp.pad(v, ((0, 0), (0, head_cols - v.shape[1])))

    # One small bias slab -> a single tiny DMA instead of three.
    bias_slab = jnp.concatenate([row(b1p), row(b2p), b3p], axis=0)  # (3, 512)

    # Block-diagonal support matrix: S[a*atom_pad + j, a] = support[j] (j<atoms).
    supp_pad = jnp.pad(support.astype(f32), (0, atom_pad - atoms))   # (128,)
    col_sel = jax.nn.one_hot(jnp.arange(out_dim), OUT_PAD, dtype=f32)  # (4, 128)
    s_mat = (supp_pad[None, :, None] * col_sel[:, None, :]
             ).reshape(head_cols, OUT_PAD)                           # (512, 128)

    # ---- batch tiling: 1 grid step for small batches, 2 tiles for larger
    #      (one per v7x TensorCore), capped so the tile always fits VMEM ----
    bp8 = _round_up(batch, 8)
    if block_b is not None:
        tb = min(_round_up(block_b, 8), max(bp8, 8))
    elif bp8 <= 256:
        tb = bp8                                    # single grid step
    else:
        tb = min(TB_CAP, _round_up((bp8 + 1) // 2, 8))   # aim for exactly 2 tiles
    bp = _round_up(bp8, tb)
    xk = jnp.pad(x.astype(f32), ((0, bp - batch), (0, 0)))

    const = lambda i: (0, 0)      # weights / slab / S: VMEM-resident across steps
    batched = lambda i: (i, 0)

    q_full = pl.pallas_call(
        functools.partial(_c51_kernel, out_dim, atom_pad, hid_pad),
        out_shape=jax.ShapeDtypeStruct((bp, OUT_PAD), jnp.float32),
        grid=(bp // tb,),
        in_specs=[
            pl.BlockSpec((tb, in_dim), batched),
            pl.BlockSpec((in_dim, hid_pad), const),
            pl.BlockSpec((hid_pad, hid_pad), const),
            pl.BlockSpec((hid_pad, head_cols), const),
            pl.BlockSpec((3, head_cols), const),
            pl.BlockSpec((head_cols, OUT_PAD), const),
        ],
        out_specs=pl.BlockSpec((tb, OUT_PAD), batched),
        compiler_params=pltpu.CompilerParams(
            dimension_semantics=("parallel",),
            vmem_limit_bytes=32 << 20),
    )(xk, w1p, w2p, w3p, bias_slab, s_mat)

    return q_full[:batch, :out_dim]


def reference_forward(x, w1, b1, w2, b2, w3, b3, support):
    h1 = jnp.maximum(x @ w1 + b1, 0.0)
    h2 = jnp.maximum(h1 @ w2 + b2, 0.0)
    logits = (h2 @ w3 + b3).reshape(x.shape[0], -1, support.size)
    dist = jnp.maximum(jax.nn.softmax(logits, axis=-1), 0.001)
    return jnp.sum(dist * support.reshape(1, 1, -1), axis=-1)


if __name__ == "__main__":
    key = jax.random.PRNGKey(0)
    k = jax.random.split(key, 8)

    # Deterministic synthetic parameters (shapes from Network.__init__).
    w1 = jax.random.normal(k[0], (IN_DIM, HIDDEN), jnp.float32) * 0.1
    b1 = jax.random.normal(k[1], (HIDDEN,), jnp.float32) * 0.1
    w2 = jax.random.normal(k[2], (HIDDEN, HIDDEN), jnp.float32) * 0.1
    b2 = jax.random.normal(k[3], (HIDDEN,), jnp.float32) * 0.1
    w3 = jax.random.normal(k[4], (HIDDEN, OUT_DIM * ATOM_SIZE), jnp.float32) * 0.1
    b3 = jax.random.normal(k[5], (OUT_DIM * ATOM_SIZE,), jnp.float32) * 0.1
    support = jnp.linspace(-10.0, 10.0, ATOM_SIZE, dtype=jnp.float32)
    params = (w1, b1, w2, b2, w3, b3, support)

    # 1) Module-scale batch (B=2): one grid step of a single padded 8-row tile.
    x_small = jax.random.normal(k[6], (BATCH, IN_DIM), jnp.float32)
    q_small = jax.block_until_ready(c51_forward(x_small, *params))
    ref_small = reference_forward(x_small, *params)
    assert q_small.shape == (BATCH, OUT_DIM), q_small.shape
    assert jnp.allclose(q_small, ref_small, atol=1e-2, rtol=1e-2), (q_small,
                                                                    ref_small)

    # 2) Larger batch exercising the two-tile grid (B=1000 -> 2 x 504-row tiles,
    #    one per TensorCore on v7x) and VMEM-resident weights across steps.
    x_big = jax.random.normal(k[7], (1000, IN_DIM), jnp.float32)
    q_big = jax.block_until_ready(c51_forward(x_big, *params))
    ref_big = reference_forward(x_big, *params)
    assert q_big.shape == (1000, OUT_DIM), q_big.shape
    assert jnp.allclose(q_big, ref_big, atol=1e-2, rtol=1e-2)

    # 3) Explicit block_b override still works (forces 4 smaller tiles).
    q_tiled = jax.block_until_ready(c51_forward(x_big, *params, block_b=256))
    assert jnp.allclose(q_tiled, ref_big, atol=1e-2, rtol=1e-2)

    print("KERNEL_OK")
</pallas_src>

<mosaic_0001>
module attributes {stable_mosaic.version = 11 : i64} {
  func.func @_c51_kernel(%arg0: i32, %arg1: memref<8x16xf32, #tpu.memory_space<vmem>>, %arg2: memref<16x128xf32, #tpu.memory_space<vmem>>, %arg3: memref<128x128xf32, #tpu.memory_space<vmem>>, %arg4: memref<128x512xf32, #tpu.memory_space<vmem>>, %arg5: memref<3x512xf32, #tpu.memory_space<vmem>>, %arg6: memref<512x128xf32, #tpu.memory_space<vmem>>, %arg7: memref<8x128xf32, #tpu.memory_space<vmem>>) attributes {dimension_semantics = [#tpu.dimension_semantics<parallel>], iteration_bounds = array<i64: 1>, scalar_prefetch = 0 : i64, scratch_operands = 0 : i64, tpu.core_type = #tpu.core_type<tc>, window_params = [{transform_indices = @transform_0, window_bounds = array<i64: 8, 16>}, {pipeline_mode = #tpu.pipeline_mode<synchronous>, transform_indices = @transform_1, window_bounds = array<i64: 16, 128>}, {pipeline_mode = #tpu.pipeline_mode<synchronous>, transform_indices = @transform_2, window_bounds = array<i64: 128, 128>}, {pipeline_mode = #tpu.pipeline_mode<synchronous>, transform_indices = @transform_3, window_bounds = array<i64: 128, 512>}, {pipeline_mode = #tpu.pipeline_mode<synchronous>, transform_indices = @transform_4, window_bounds = array<i64: 3, 512>}, {pipeline_mode = #tpu.pipeline_mode<synchronous>, transform_indices = @transform_5, window_bounds = array<i64: 512, 128>}, {transform_indices = @transform_6, window_bounds = array<i64: 8, 128>}]} {
    %c0 = arith.constant 0 : index
    %c0_0 = arith.constant 0 : index
    %0 = vector.load %arg5[%c0, %c0_0] : memref<3x512xf32, #tpu.memory_space<vmem>>, vector<1x128xf32>
    %c1 = arith.constant 1 : index
    %c0_1 = arith.constant 0 : index
    %1 = vector.load %arg5[%c1, %c0_1] : memref<3x512xf32, #tpu.memory_space<vmem>>, vector<1x128xf32>
    %c2 = arith.constant 2 : index
    %c0_2 = arith.constant 0 : index
    %2 = vector.load %arg5[%c2, %c0_2] : memref<3x512xf32, #tpu.memory_space<vmem>>, vector<1x512xf32>
    %c0_3 = arith.constant 0 : index
    %c0_4 = arith.constant 0 : index
    %3 = vector.load %arg1[%c0_3, %c0_4] : memref<8x16xf32, #tpu.memory_space<vmem>>, vector<8x16xf32>
    %c0_5 = arith.constant 0 : index
    %c0_6 = arith.constant 0 : index
    %4 = vector.load %arg2[%c0_5, %c0_6] : memref<16x128xf32, #tpu.memory_space<vmem>>, vector<16x128xf32>
    %cst = arith.constant dense<0.000000e+00> : vector<8x128xf32>
    %5 = tpu.matmul %3, %4, %cst {dimension_numbers = #tpu.dot_dimension_numbers<[1], [0], [0], [1], [0, 0, 1, 1], [], []>} : vector<8x16xf32>, vector<16x128xf32>, vector<8x128xf32> -> vector<8x128xf32>
    %6 = vector.broadcast %0 : vector<1x128xf32> to vector<8x128xf32>
    %7 = arith.addf %5, %6 : vector<8x128xf32>
    %cst_7 = arith.constant 0.000000e+00 : f32
    %8 = vector.broadcast %cst_7 : f32 to vector<8x128xf32>
    %9 = arith.maximumf %7, %8 : vector<8x128xf32>
    %c0_8 = arith.constant 0 : index
    %c0_9 = arith.constant 0 : index
    %10 = vector.load %arg3[%c0_8, %c0_9] : memref<128x128xf32, #tpu.memory_space<vmem>>, vector<128x128xf32>
    %cst_10 = arith.constant dense<0.000000e+00> : vector<8x128xf32>
    %11 = tpu.matmul %9, %10, %cst_10 {dimension_numbers = #tpu.dot_dimension_numbers<[1], [0], [0], [1], [0, 0, 1, 1], [], []>} : vector<8x128xf32>, vector<128x128xf32>, vector<8x128xf32> -> vector<8x128xf32>
    %12 = vector.broadcast %1 : vector<1x128xf32> to vector<8x128xf32>
    %13 = arith.addf %11, %12 : vector<8x128xf32>
    %cst_11 = arith.constant 0.000000e+00 : f32
    %14 = vector.broadcast %cst_11 : f32 to vector<8x128xf32>
    %15 = arith.maximumf %13, %14 : vector<8x128xf32>
    %c0_12 = arith.constant 0 : index
    %c0_13 = arith.constant 0 : index
    %16 = vector.load %arg4[%c0_12, %c0_13] : memref<128x512xf32, #tpu.memory_space<vmem>>, vector<128x512xf32>
    %cst_14 = arith.constant dense<0.000000e+00> : vector<8x512xf32>
    %17 = tpu.matmul %15, %16, %cst_14 {dimension_numbers = #tpu.dot_dimension_numbers<[1], [0], [0], [1], [0, 0, 1, 1], [], []>} : vector<8x128xf32>, vector<128x512xf32>, vector<8x512xf32> -> vector<8x512xf32>
    %18 = vector.broadcast %2 : vector<1x512xf32> to vector<8x512xf32>
    %19 = arith.addf %17, %18 : vector<8x512xf32>
    %20 = vector.extract_strided_slice %19 {offsets = [0, 0], sizes = [8, 128], strides = [1, 1]} : vector<8x512xf32> to vector<8x128xf32>
    %cst_15 = arith.constant dense<0xFF800000> : vector<8xf32>
    %21 = vector.multi_reduction <maximumf>, %20, %cst_15 [1] : vector<8x128xf32> to vector<8xf32>
    %22 = vector.shape_cast %21 : vector<8xf32> to vector<8x1xf32>
    %23 = vector.broadcast %22 : vector<8x1xf32> to vector<8x128xf32>
    %24 = arith.subf %20, %23 : vector<8x128xf32>
    %25 = math.exp %24 : vector<8x128xf32>
    %cst_16 = arith.constant dense<0.000000e+00> : vector<8xf32>
    %26 = vector.multi_reduction <add>, %25, %cst_16 [1] : vector<8x128xf32> to vector<8xf32>
    %27 = vector.shape_cast %26 : vector<8xf32> to vector<8x1xf32>
    %28 = tpu.reciprocal %27 {approx = true} : vector<8x1xf32> -> vector<8x1xf32>
    %29 = vector.broadcast %28 : vector<8x1xf32> to vector<8x128xf32>
    %30 = arith.mulf %25, %29 : vector<8x128xf32>
    %cst_17 = arith.constant 1.000000e-03 : f32
    %31 = vector.broadcast %cst_17 : f32 to vector<8x128xf32>
    %32 = arith.maximumf %30, %31 : vector<8x128xf32>
    %33 = vector.extract_strided_slice %19 {offsets = [0, 128], sizes = [8, 128], strides = [1, 1]} : vector<8x512xf32> to vector<8x128xf32>
    %cst_18 = arith.constant dense<0xFF800000> : vector<8xf32>
    %34 = vector.multi_reduction <maximumf>, %33, %cst_18 [1] : vector<8x128xf32> to vector<8xf32>
    %35 = vector.shape_cast %34 : vector<8xf32> to vector<8x1xf32>
    %36 = vector.broadcast %35 : vector<8x1xf32> to vector<8x128xf32>
    %37 = arith.subf %33, %36 : vector<8x128xf32>
    %38 = math.exp %37 : vector<8x128xf32>
    %cst_19 = arith.constant dense<0.000000e+00> : vector<8xf32>
    %39 = vector.multi_reduction <add>, %38, %cst_19 [1] : vector<8x128xf32> to vector<8xf32>
    %40 = vector.shape_cast %39 : vector<8xf32> to vector<8x1xf32>
    %41 = tpu.reciprocal %40 {approx = true} : vector<8x1xf32> -> vector<8x1xf32>
    %42 = vector.broadcast %41 : vector<8x1xf32> to vector<8x128xf32>
    %43 = arith.mulf %38, %42 : vector<8x128xf32>
    %cst_20 = arith.constant 1.000000e-03 : f32
    %44 = vector.broadcast %cst_20 : f32 to vector<8x128xf32>
    %45 = arith.maximumf %43, %44 : vector<8x128xf32>
    %46 = vector.extract_strided_slice %19 {offsets = [0, 256], sizes = [8, 128], strides = [1, 1]} : vector<8x512xf32> to vector<8x128xf32>
    %cst_21 = arith.constant dense<0xFF800000> : vector<8xf32>
    %47 = vector.multi_reduction <maximumf>, %46, %cst_21 [1] : vector<8x128xf32> to vector<8xf32>
    %48 = vector.shape_cast %47 : vector<8xf32> to vector<8x1xf32>
    %49 = vector.broadcast %48 : vector<8x1xf32> to vector<8x128xf32>
    %50 = arith.subf %46, %49 : vector<8x128xf32>
    %51 = math.exp %50 : vector<8x128xf32>
    %cst_22 = arith.constant dense<0.000000e+00> : vector<8xf32>
    %52 = vector.multi_reduction <add>, %51, %cst_22 [1] : vector<8x128xf32> to vector<8xf32>
    %53 = vector.shape_cast %52 : vector<8xf32> to vector<8x1xf32>
    %54 = tpu.reciprocal %53 {approx = true} : vector<8x1xf32> -> vector<8x1xf32>
    %55 = vector.broadcast %54 : vector<8x1xf32> to vector<8x128xf32>
    %56 = arith.mulf %51, %55 : vector<8x128xf32>
    %cst_23 = arith.constant 1.000000e-03 : f32
    %57 = vector.broadcast %cst_23 : f32 to vector<8x128xf32>
    %58 = arith.maximumf %56, %57 : vector<8x128xf32>
    %59 = vector.extract_strided_slice %19 {offsets = [0, 384], sizes = [8, 128], strides = [1, 1]} : vector<8x512xf32> to vector<8x128xf32>
    %cst_24 = arith.constant dense<0xFF800000> : vector<8xf32>
    %60 = vector.multi_reduction <maximumf>, %59, %cst_24 [1] : vector<8x128xf32> to vector<8xf32>
    %61 = vector.shape_cast %60 : vector<8xf32> to vector<8x1xf32>
    %62 = vector.broadcast %61 : vector<8x1xf32> to vector<8x128xf32>
    %63 = arith.subf %59, %62 : vector<8x128xf32>
    %64 = math.exp %63 : vector<8x128xf32>
    %cst_25 = arith.constant dense<0.000000e+00> : vector<8xf32>
    %65 = vector.multi_reduction <add>, %64, %cst_25 [1] : vector<8x128xf32> to vector<8xf32>
    %66 = vector.shape_cast %65 : vector<8xf32> to vector<8x1xf32>
    %67 = tpu.reciprocal %66 {approx = true} : vector<8x1xf32> -> vector<8x1xf32>
    %68 = vector.broadcast %67 : vector<8x1xf32> to vector<8x128xf32>
    %69 = arith.mulf %64, %68 : vector<8x128xf32>
    %cst_26 = arith.constant 1.000000e-03 : f32
    %70 = vector.broadcast %cst_26 : f32 to vector<8x128xf32>
    %71 = arith.maximumf %69, %70 : vector<8x128xf32>
    %72 = tpu.concatenate %32, %45, %58, %71 in 1 : vector<8x128xf32>, vector<8x128xf32>, vector<8x128xf32>, vector<8x128xf32> -> vector<8x512xf32>
    %c0_27 = arith.constant 0 : index
    %c0_28 = arith.constant 0 : index
    %73 = vector.load %arg6[%c0_27, %c0_28] : memref<512x128xf32, #tpu.memory_space<vmem>>, vector<512x128xf32>
    %cst_29 = arith.constant dense<0.000000e+00> : vector<8x128xf32>
    %74 = tpu.matmul %72, %73, %cst_29 {dimension_numbers = #tpu.dot_dimension_numbers<[1], [0], [0], [1], [0, 0, 1, 1], [], []>} : vector<8x512xf32>, vector<512x128xf32>, vector<8x128xf32> -> vector<8x128xf32>
    %c0_30 = arith.constant 0 : index
    %c0_31 = arith.constant 0 : index
    %75 = vector.load %arg7[%c0_30, %c0_31] : memref<8x128xf32, #tpu.memory_space<vmem>>, vector<8x128xf32>
    tpu.vector_store %arg7[%c0_30, %c0_31], %74 {strides = array<i32>} : memref<8x128xf32, #tpu.memory_space<vmem>>, vector<8x128xf32>,
    return
  }
  func.func @transform_0(%arg0: i32) -> (i32, i32) {
    %c0_i32 = arith.constant 0 : i32
    %c0_i32_0 = arith.constant 0 : i32
    return %arg0, %c0_i32 : i32, i32
  }
  func.func @transform_1(%arg0: i32) -> (i32, i32) {
    %c0_i32 = arith.constant 0 : i32
    %c0_i32_0 = arith.constant 0 : i32
    %c0_i32_1 = arith.constant 0 : i32
    return %c0_i32, %c0_i32_0 : i32, i32
  }
  func.func @transform_2(%arg0: i32) -> (i32, i32) {
    %c0_i32 = arith.constant 0 : i32
    %c0_i32_0 = arith.constant 0 : i32
    %c0_i32_1 = arith.constant 0 : i32
    return %c0_i32, %c0_i32_0 : i32, i32
  }
  func.func @transform_3(%arg0: i32) -> (i32, i32) {
    %c0_i32 = arith.constant 0 : i32
    %c0_i32_0 = arith.constant 0 : i32
    %c0_i32_1 = arith.constant 0 : i32
    return %c0_i32, %c0_i32_0 : i32, i32
  }
  func.func @transform_4(%arg0: i32) -> (i32, i32) {
    %c0_i32 = arith.constant 0 : i32
    %c0_i32_0 = arith.constant 0 : i32
    %c0_i32_1 = arith.constant 0 : i32
    return %c0_i32, %c0_i32_0 : i32, i32
  }
  func.func @transform_5(%arg0: i32) -> (i32, i32) {
    %c0_i32 = arith.constant 0 : i32
    %c0_i32_0 = arith.constant 0 : i32
    %c0_i32_1 = arith.constant 0 : i32
    return %c0_i32, %c0_i32_0 : i32, i32
  }
  func.func @transform_6(%arg0: i32) -> (i32, i32) {
    %c0_i32 = arith.constant 0 : i32
    %c0_i32_0 = arith.constant 0 : i32
    return %arg0, %c0_i32 : i32, i32
  }
}

</mosaic_0001>

<bundles_post_ra>
// kernel: c51_forward.1
= control target key start
LH: loop header
LB: loop body
LE: loop exit
PB: predicated region body
PF: predicated region fallthrough
CT: control target
= control target key end

     0   :  { %vm31_vm0 = vcmask 130048   ;;  %s972_s1 = inlined_call_operand.vmem [shape: f32[16,128], index: 1, kind: input, shape index: {}]   ;;  %s973_s0 = inlined_call_operand.vmem [shape: f32[8,16], index: 0, kind: input, shape index: {}]   ;;  %s974_s2 = inlined_call_operand.vmem [shape: f32[128,128], index: 2, kind: input, shape index: {}]   ;;  %s975_s4 = inlined_call_operand.vmem [shape: f32[3,512], index: 4, kind: input, shape index: {}]   ;;  %s976_s3 = inlined_call_operand.vmem [shape: f32[128,512], index: 3, kind: input, shape index: {}]   ;;  %s977_s5 = inlined_call_operand.vmem [shape: f32[512,128], index: 5, kind: input, shape index: {}]   ;;  %s978_s6 = inlined_call_operand.vmem [shape: f32[8,128], index: 6, kind: output, shape index: {}]  }
   0x1   :  { %v29_v0 = vld [vmem:[%s972_s1 + $0x8] sm:$0xff]  ;;  %v28_v1 = vld [vmem:[%s972_s1] sm:$0xff]  ;;  %v71_v3 = vld [vmem:[%s974_s2 + $0x78] sm:$0xff] }
   0x2   :  { %49 = vmatpush.msra.mxu0 %v29_v0  ;;  %v27_v2 = vld [vmem:[%s973_s0] sm:$0xff]  ;;  %v70_v4 = vld [vmem:[%s974_s2 + $0x70] sm:$0xff]  ;;  %73 = vmatpush.msra.mxu1 %v71_v3  ;;  %v69_v5 = vld [vmem:[%s974_s2 + $0x68] sm:$0xff] }
   0x3   :  { %v68_v6 = vld [vmem:[%s974_s2 + $0x60] sm:$0xff]  ;;  %v67_v7 = vld [vmem:[%s974_s2 + $0x58] sm:$0xff]  ;;  %v66_v8 = vld [vmem:[%s974_s2 + $0x50] sm:$0xff] }
   0x4   :  { %50 = vmatpush.msra.mxu0 %v28_v1  ;;  %74 = vmatpush.msra.mxu1 %v70_v4  ;;  %v65_v9 = vld [vmem:[%s974_s2 + $0x48] sm:$0xff]  ;;  %v64_v10 = vld [vmem:[%s974_s2 + $0x40] sm:$0xff]  ;;  %v63_v11 = vld [vmem:[%s974_s2 + $0x38] sm:$0xff] }
   0x5   :  { %437 = vmatmul.msk.f32.vlgmr.msra.gmra.mxu0 %vm31_vm0, %v27_v2  ;;  %v62_v12 = vld [vmem:[%s974_s2 + $0x30] sm:$0xff]  ;;  %v61_v13 = vld [vmem:[%s974_s2 + $0x28] sm:$0xff]  ;;  %v60_v14 = vld [vmem:[%s974_s2 + $0x20] sm:$0xff] }
   0x6   :  { %75 = vmatpush.msra.mxu1 %v69_v5  ;;  %v59_v15 = vld [vmem:[%s974_s2 + $0x18] sm:$0xff]  ;;  %v58_v16 = vld [vmem:[%s974_s2 + $0x10] sm:$0xff]  ;;  %v57_v17 = vld [vmem:[%s974_s2 + $0x8] sm:$0xff] }
   0x7   :  { %v56_v18 = vld [vmem:[%s974_s2] sm:$0xff]  ;;  %v155_v20 = vld [vmem:[%s976_s3 + $0x1e8] sm:$0xff]  ;;  %v156_v21 = vld [vmem:[%s976_s3 + $0x1f0] sm:$0xff] }
   0x8   :  { %76 = vmatpush.msra.mxu1 %v68_v6  ;;  %v154_v19 = vld [vmem:[%s976_s3 + $0x1e0] sm:$0xff]  ;;  %187 = vmatpush.msra.mxu3 %v155_v20  ;;  %v157_v22 = vld [vmem:[%s976_s3 + $0x1f8] sm:$0xff]  ;;  %v151_v24 = vld [vmem:[%s976_s3 + $0x1c8] sm:$0xff] }
   0x9   :  { %167 = vmatpush.msra.mxu2 %v154_v19  ;;  %v150_v23 = vld [vmem:[%s976_s3 + $0x1c0] sm:$0xff]  ;;  %207 = vmatpush.msrb.mxu0 %v156_v21  ;;  %v152_v25 = vld [vmem:[%s976_s3 + $0x1d0] sm:$0xff]  ;;  %v153_v26 = vld [vmem:[%s976_s3 + $0x1d8] sm:$0xff] }
   0xa   :  { %77 = vmatpush.msra.mxu1 %v67_v7  ;;  %v146_v27 = vld [vmem:[%s976_s3 + $0x1a0] sm:$0xff]  ;;  %188 = vmatpush.msra.mxu3 %v151_v24  ;;  %v147_v28 = vld [vmem:[%s976_s3 + $0x1a8] sm:$0xff]  ;;  %v148_v29 = vld [vmem:[%s976_s3 + $0x1b0] sm:$0xff] }
   0xb   :  { %168 = vmatpush.msra.mxu2 %v150_v23  ;;  %v149_v30 = vld [vmem:[%s976_s3 + $0x1b8] sm:$0xff]  ;;  %208 = vmatpush.msrb.mxu0 %v152_v25  ;;  %v142_v31 = vld [vmem:[%s976_s3 + $0x180] sm:$0xff]  ;;  %v143_v32 = vld [vmem:[%s976_s3 + $0x188] sm:$0xff] }
   0xc   :  { %78 = vmatpush.msra.mxu1 %v66_v8  ;;  %189 = vmatpush.msra.mxu3 %v147_v28  ;;  %v144_v33 = vld [vmem:[%s976_s3 + $0x190] sm:$0xff]  ;;  %v145_v34 = vld [vmem:[%s976_s3 + $0x198] sm:$0xff]  ;;  %v138_v35 = vld [vmem:[%s976_s3 + $0x160] sm:$0xff] }
   0xd   :  { %169 = vmatpush.msra.mxu2 %v146_v27  ;;  %209 = vmatpush.msrb.mxu0 %v148_v29  ;;  %v139_v36 = vld [vmem:[%s976_s3 + $0x168] sm:$0xff]  ;;  %v140_v37 = vld [vmem:[%s976_s3 + $0x170] sm:$0xff]  ;;  %v141_v38 = vld [vmem:[%s976_s3 + $0x178] sm:$0xff] }
   0xe   :  { %79 = vmatpush.msra.mxu1 %v65_v9  ;;  %190 = vmatpush.msra.mxu3 %v143_v32  ;;  %v134_v39 = vld [vmem:[%s976_s3 + $0x140] sm:$0xff]  ;;  %v135_v40 = vld [vmem:[%s976_s3 + $0x148] sm:$0xff]  ;;  %v136_v41 = vld [vmem:[%s976_s3 + $0x150] sm:$0xff] }
   0xf   :  { %170 = vmatpush.msra.mxu2 %v142_v31  ;;  %210 = vmatpush.msrb.mxu0 %v144_v33  ;;  %v137_v42 = vld [vmem:[%s976_s3 + $0x158] sm:$0xff]  ;;  %v130_v43 = vld [vmem:[%s976_s3 + $0x120] sm:$0xff]  ;;  %v131_v44 = vld [vmem:[%s976_s3 + $0x128] sm:$0xff] }
  0x10   :  { %80 = vmatpush.msra.mxu1 %v64_v10  ;;  %191 = vmatpush.msra.mxu3 %v139_v36  ;;  %v132_v45 = vld [vmem:[%s976_s3 + $0x130] sm:$0xff]  ;;  %v133_v46 = vld [vmem:[%s976_s3 + $0x138] sm:$0xff]  ;;  %v126_v47 = vld [vmem:[%s976_s3 + $0x100] sm:$0xff] }
  0x11   :  { %171 = vmatpush.msra.mxu2 %v138_v35  ;;  %211 = vmatpush.msrb.mxu0 %v140_v37  ;;  %v127_v48 = vld [vmem:[%s976_s3 + $0x108] sm:$0xff]  ;;  %v128_v49 = vld [vmem:[%s976_s3 + $0x110] sm:$0xff]  ;;  %v129_v50 = vld [vmem:[%s976_s3 + $0x118] sm:$0xff] }
  0x12   :  { %81 = vmatpush.msra.mxu1 %v63_v11  ;;  %192 = vmatpush.msra.mxu3 %v135_v40  ;;  %v122_v51 = vld [vmem:[%s976_s3 + $0xe0] sm:$0xff]  ;;  %v123_v52 = vld [vmem:[%s976_s3 + $0xe8] sm:$0xff]  ;;  %v124_v53 = vld [vmem:[%s976_s3 + $0xf0] sm:$0xff] }
  0x13   :  { %172 = vmatpush.msra.mxu2 %v134_v39  ;;  %212 = vmatpush.msrb.mxu0 %v136_v41  ;;  %v125_v54 = vld [vmem:[%s976_s3 + $0xf8] sm:$0xff]  ;;  %v118_v55 = vld [vmem:[%s976_s3 + $0xc0] sm:$0xff]  ;;  %v119_v56 = vld [vmem:[%s976_s3 + $0xc8] sm:$0xff] }
  0x14   :  { %82 = vmatpush.msra.mxu1 %v62_v12  ;;  %193 = vmatpush.msra.mxu3 %v131_v44  ;;  %v120_v57 = vld [vmem:[%s976_s3 + $0xd0] sm:$0xff]  ;;  %v121_v58 = vld [vmem:[%s976_s3 + $0xd8] sm:$0xff]  ;;  %v114_v59 = vld [vmem:[%s976_s3 + $0xa0] sm:$0xff] }
  0x15   :  { %173 = vmatpush.msra.mxu2 %v130_v43  ;;  %213 = vmatpush.msrb.mxu0 %v132_v45  ;;  %v115_v60 = vld [vmem:[%s976_s3 + $0xa8] sm:$0xff]  ;;  %v116_v61 = vld [vmem:[%s976_s3 + $0xb0] sm:$0xff]  ;;  %v117_v62 = vld [vmem:[%s976_s3 + $0xb8] sm:$0xff] }
  0x16   :  { %83 = vmatpush.msra.mxu1 %v61_v13  ;;  %194 = vmatpush.msra.mxu3 %v127_v48  ;;  %v110_v63 = vld [vmem:[%s976_s3 + $0x80] sm:$0xff]  ;;  %v111_v0 = vld [vmem:[%s976_s3 + $0x88] sm:$0xff]  ;;  %v112_v1 = vld [vmem:[%s976_s3 + $0x90] sm:$0xff] }
  0x17   :  { %174 = vmatpush.msra.mxu2 %v126_v47  ;;  %214 = vmatpush.msrb.mxu0 %v128_v49  ;;  %v113_v2 = vld [vmem:[%s976_s3 + $0x98] sm:$0xff]  ;;  %v106_v3 = vld [vmem:[%s976_s3 + $0x60] sm:$0xff]  ;;  %v107_v4 = vld [vmem:[%s976_s3 + $0x68] sm:$0xff] }
  0x18   :  { %84 = vmatpush.msra.mxu1 %v60_v14  ;;  %195 = vmatpush.msra.mxu3 %v123_v52  ;;  %v108_v5 = vld [vmem:[%s976_s3 + $0x70] sm:$0xff]  ;;  %v109_v6 = vld [vmem:[%s976_s3 + $0x78] sm:$0xff]  ;;  %v438_v7 = vld [vmem:[%s975_s4] ss:$0 sm:$0xff] }
  0x19   :  { %175 = vmatpush.msra.mxu2 %v122_v51  ;;  %215 = vmatpush.msrb.mxu0 %v124_v53  ;;  %v102_v11 = vld [vmem:[%s976_s3 + $0x40] sm:$0xff]  ;;  %v103_v12 = vld [vmem:[%s976_s3 + $0x48] sm:$0xff]  ;;  %v104_v13 = vld [vmem:[%s976_s3 + $0x50] sm:$0xff] }
  0x1a   :  { %85 = vmatpush.msra.mxu1 %v59_v15  ;;  %196 = vmatpush.msra.mxu3 %v119_v56  ;;  %v105_v14 = vld [vmem:[%s976_s3 + $0x58] sm:$0xff]  ;;  %v98_v15 = vld [vmem:[%s976_s3 + $0x20] sm:$0xff]  ;;  %v95_v20 = vld [vmem:[%s976_s3 + $0x8] sm:$0xff] }
  0x1b   :  { %176 = vmatpush.msra.mxu2 %v118_v55  ;;  %216 = vmatpush.msrb.mxu0 %v120_v57  ;;  %v94_v19 = vld [vmem:[%s976_s3] sm:$0xff]  ;;  %v96_v21 = vld [vmem:[%s976_s3 + $0x10] sm:$0xff]  ;;  %v334_v40 = vld [vmem:[%s977_s5 + $0x178] sm:$0xff] }
  0x1c   :  { %86 = vmatpush.msra.mxu1 %v58_v16  ;;  %197 = vmatpush.msra.mxu3 %v115_v60  ;;  %v99_v16 = vld [vmem:[%s976_s3 + $0x28] sm:$0xff]  ;;  %v439_v23 = vld [vmem:[%s975_s4 + $0x1] ss:$0 sm:$0xff]  ;;  %v333_v41 = vld [vmem:[%s977_s5 + $0x170] sm:$0xff] }
  0x1d   :  { %177 = vmatpush.msra.mxu2 %v114_v59  ;;  %217 = vmatpush.msrb.mxu0 %v116_v61  ;;  %v436_v27 = vld [vmem:[%s975_s4 + $0x2] ss:$4 sm:$0xf]  ;;  %v301_v43 = vld [vmem:[%s977_s5 + $0x70] sm:$0xff]  ;;  %v350_v45 = vld [vmem:[%s977_s5 + $0x1f8] sm:$0xff] }
  0x1e   :  { %87 = vmatpush.msra.mxu1 %v57_v17  ;;  %198 = vmatpush.msra.mxu3 %v111_v0  ;;  %v100_v17 = vld [vmem:[%s976_s3 + $0x30] sm:$0xff]  ;;  %v161_v28 = vperm.slane %v436_v27, 2  ;;  %v159_v31 = vperm.slane %v436_v27, 0  ;;  %v162_v32 = vperm.slane %v436_v27, 3  ;;  %v160_v37 = vperm.slane %v436_v27, 1  ;;  %v332_v44 = vld [vmem:[%s977_s5 + $0x168] sm:$0xff] }
  0x1f   :  { %178 = vmatpush.msra.mxu2 %v110_v63  ;;  %218 = vmatpush.msrb.mxu0 %v112_v1  ;;  %v349_v47 = vld [vmem:[%s977_s5 + $0x1f0] sm:$0xff]  ;;  %v331_v48 = vld [vmem:[%s977_s5 + $0x160] sm:$0xff]  ;;  %v348_v49 = vld [vmem:[%s977_s5 + $0x1e8] sm:$0xff] }
  0x20   :  { %88 = vmatpush.msra.mxu1 %v56_v18  ;;  %199 = vmatpush.msra.mxu3 %v107_v4  ;;  %v101_v18 = vld [vmem:[%s976_s3 + $0x38] sm:$0xff]  ;;  %v347_v53 = vld [vmem:[%s977_s5 + $0x1e0] sm:$0xff]  ;;  %v316_v57 = vld [vmem:[%s977_s5 + $0xe8] sm:$0xff] }
  0x21   :  { %179 = vmatpush.msra.mxu2 %v106_v3  ;;  %219 = vmatpush.msrb.mxu0 %v108_v5  ;;  %v318_v51 = vld [vmem:[%s977_s5 + $0xf8] sm:$0xff]  ;;  %v329_v59 = vld [vmem:[%s977_s5 + $0x150] sm:$0xff]  ;;  %v328_v63 = vld [vmem:[%s977_s5 + $0x148] sm:$0xff] }
  0x22   :  { %227 = vmatpush.msrb.mxu1 %v157_v22  ;;  %200 = vmatpush.msra.mxu3 %v103_v12  ;;  %v97_v22 = vld [vmem:[%s976_s3 + $0x18] sm:$0xff]  ;;  %v297_v61 = vld [vmem:[%s977_s5 + $0x50] sm:$0xff]  ;;  %v296_v1 = vld [vmem:[%s977_s5 + $0x48] sm:$0xff] }
  0x23   :  { %180 = vmatpush.msra.mxu2 %v102_v11  ;;  %220 = vmatpush.msrb.mxu0 %v104_v13  ;;  %v330_v52 = vld [vmem:[%s977_s5 + $0x158] sm:$0xff]  ;;  %v345_v0 = vld [vmem:[%s977_s5 + $0x1d0] sm:$0xff]  ;;  %v327_v3 = vld [vmem:[%s977_s5 + $0x140] sm:$0xff] }
  0x24   :  { %228 = vmatpush.msrb.mxu1 %v153_v26  ;;  %201 = vmatpush.msra.mxu3 %v99_v16  ;;  %v298_v56 = vld [vmem:[%s977_s5 + $0x58] sm:$0xff]  ;;  %v313_v27 = vld [vmem:[%s977_s5 + $0xd0] sm:$0xff] }
  0x25   :  { %181 = vmatpush.msra.mxu2 %v98_v15  ;;  %221 = vmatpush.msrb.mxu0 %v100_v17  ;;  %v346_v60 = vld [vmem:[%s977_s5 + $0x1d8] sm:$0xff] }
  0x26   :  { %229 = vmatpush.msrb.mxu1 %v149_v30  ;;  %202 = vmatpush.msra.mxu3 %v95_v20  ;;  %v326_v5 = vld [vmem:[%s977_s5 + $0x138] sm:$0xff]  ;;  %v324_v20 = vld [vmem:[%s977_s5 + $0x128] sm:$0xff] }
  0x27   :  { %182 = vmatpush.msra.mxu2 %v94_v19  ;;  %222 = vmatpush.msrb.mxu0 %v96_v21  ;;  %v315_v19 = vld [vmem:[%s977_s5 + $0xe0] sm:$0xff]  ;;  %v344_v21 = vld [vmem:[%s977_s5 + $0x1c8] sm:$0xff] }
  0x28   :  { %230 = vmatpush.msrb.mxu1 %v145_v34  ;;  %371 = vmatpush.msrb.mxu3 %v318_v51  ;;  %v306_v51 = vld [vmem:[%s977_s5 + $0x98] sm:$0xff] }
  0x29   :  { %391 = vmatpush.msra.mxu0 %v334_v40  ;;  %v319_v40 = vld [vmem:[%s977_s5 + $0x100] sm:$0xff] }
  0x2a   :  { %231 = vmatpush.msrb.mxu1 %v141_v38 }
  0x2b   :  { %392 = vmatpush.msra.mxu0 %v333_v41  ;;  %v339_v41 = vld [vmem:[%s977_s5 + $0x1a0] sm:$0xff] }
  0x2c   :  { %232 = vmatpush.msrb.mxu1 %v137_v42  ;;  %v302_v42 = vld [vmem:[%s977_s5 + $0x78] sm:$0xff] }
  0x2d   :  { %351 = vmatpush.msrb.mxu2 %v302_v42  ;;  %393 = vmatpush.msra.mxu0 %v332_v44  ;;  %v289_v42 = vld [vmem:[%s977_s5 + $0x10] sm:$0xff]  ;;  %v338_v44 = vld [vmem:[%s977_s5 + $0x198] sm:$0xff] }
  0x2e   :  { %233 = vmatpush.msrb.mxu1 %v133_v46  ;;  %v300_v46 = vld [vmem:[%s977_s5 + $0x68] sm:$0xff] }
  0x2f   :  { %352 = vmatpush.msrb.mxu2 %v301_v43  ;;  %394 = vmatpush.msra.mxu0 %v331_v48  ;;  %v309_v43 = vld [vmem:[%s977_s5 + $0xb0] sm:$0xff]  ;;  %v287_v48 = vld [vmem:[%s977_s5] sm:$0xff] }
  0x30   :  { %234 = vmatpush.msrb.mxu1 %v129_v50  ;;  %v299_v50 = vld [vmem:[%s977_s5 + $0x60] sm:$0xff] }
  0x31   :  { %353 = vmatpush.msrb.mxu2 %v300_v46  ;;  %395 = vmatpush.msra.mxu0 %v330_v52  ;;  %v308_v46 = vld [vmem:[%s977_s5 + $0xa8] sm:$0xff]  ;;  %v335_v52 = vld [vmem:[%s977_s5 + $0x180] sm:$0xff] }
  0x32   :  { %235 = vmatpush.msrb.mxu1 %v125_v54  ;;  %v317_v54 = vld [vmem:[%s977_s5 + $0xf0] sm:$0xff] }
  0x33   :  { %354 = vmatpush.msrb.mxu2 %v299_v50  ;;  %372 = vmatpush.msrb.mxu3 %v317_v54  ;;  %v336_v50 = vld [vmem:[%s977_s5 + $0x188] sm:$0xff] }
  0x34   :  { %236 = vmatpush.msrb.mxu1 %v121_v58  ;;  %396 = vmatpush.msra.mxu0 %v329_v59  ;;  %v304_v54 = vld [vmem:[%s977_s5 + $0x88] sm:$0xff] }
  0x35   :  { %355 = vmatpush.msrb.mxu2 %v298_v56  ;;  %373 = vmatpush.msrb.mxu3 %v316_v57 }
  0x36   :  { %237 = vmatpush.msrb.mxu1 %v117_v62  ;;  %397 = vmatpush.msra.mxu0 %v328_v63 }
  0x37   :  { %356 = vmatpush.msrb.mxu2 %v297_v61  ;;  %374 = vmatpush.msrb.mxu3 %v315_v19 }
  0x38   :  { %238 = vmatpush.msrb.mxu1 %v113_v2  ;;  %398 = vmatpush.msra.mxu0 %v327_v3 }
  0x39   :  { %357 = vmatpush.msrb.mxu2 %v296_v1 }
  0x3a   :  { %239 = vmatpush.msrb.mxu1 %v109_v6  ;;  %399 = vmatpush.msra.mxu0 %v326_v5 }
  0x3c   :  { %240 = vmatpush.msrb.mxu1 %v105_v14 }
  0x3e   :  { %241 = vmatpush.msrb.mxu1 %v101_v18  ;;  %v295_v18 = vld [vmem:[%s977_s5 + $0x40] sm:$0xff] }
  0x3f   :  { %358 = vmatpush.msrb.mxu2 %v295_v18 }
  0x40   :  { %242 = vmatpush.msrb.mxu1 %v97_v22  ;;  %v294_v22 = vld [vmem:[%s977_s5 + $0x38] sm:$0xff] }
  0x41   :  { %359 = vmatpush.msrb.mxu2 %v294_v22 }
  0x82   :  { %v52_v8 = vpop.f32.mrf.mxu0 }
  0x83   :  { %v53_v9 = vadd.f32 %v438_v7, %v52_v8 }
  0x85   :  { %v55_v10 = vmax.f32 %v53_v9, 0.0  ;;  %v325_v9 = vld [vmem:[%s977_s5 + $0x130] sm:$0xff] }
  0x86   :  { %400 = vmatpush.msra.mxu0 %v325_v9 }
  0x87   :  { %89 = vmatmul.f32.vlgmr.msra.gmra.mxu1 %v55_v10 }
  0x88   :  { %411 = vmatpush.msra.mxu1 %v350_v45  ;;  %401 = vmatpush.msra.mxu0 %v324_v20  ;;  %v288_v45 = vld [vmem:[%s977_s5 + $0x8] sm:$0xff] }
  0x8a   :  { %412 = vmatpush.msra.mxu1 %v349_v47  ;;  %v337_v47 = vld [vmem:[%s977_s5 + $0x190] sm:$0xff] }
  0x8c   :  { %413 = vmatpush.msra.mxu1 %v348_v49  ;;  %v307_v49 = vld [vmem:[%s977_s5 + $0xa0] sm:$0xff] }
  0x8e   :  { %414 = vmatpush.msra.mxu1 %v347_v53  ;;  %v305_v53 = vld [vmem:[%s977_s5 + $0x90] sm:$0xff] }
  0x90   :  { %415 = vmatpush.msra.mxu1 %v346_v60 }
  0x92   :  { %416 = vmatpush.msra.mxu1 %v345_v0 }
  0x94   :  { %417 = vmatpush.msra.mxu1 %v344_v21 }
 0x104   :  { %v90_v24 = vpop.f32.mrf.mxu1 }
 0x105   :  { %v91_v25 = vadd.f32 %v439_v23, %v90_v24  ;;  %v314_v23 = vld [vmem:[%s977_s5 + $0xd8] sm:$0xff]  ;;  %v323_v24 = vld [vmem:[%s977_s5 + $0x120] sm:$0xff] }
 0x106   :  { %375 = vmatpush.msrb.mxu3 %v314_v23  ;;  %402 = vmatpush.msra.mxu0 %v323_v24 }
 0x107   :  { %v93_v26 = vmax.f32 %v91_v25, 0.0  ;;  %v343_v25 = vld [vmem:[%s977_s5 + $0x1c0] sm:$0xff] }
 0x108   :  { %418 = vmatpush.msra.mxu1 %v343_v25  ;;  %376 = vmatpush.msrb.mxu3 %v313_v27 }
 0x109   :  { %183 = vmatmul.f32.vlgmr.msra.gmra.mxu2 %v93_v26  ;;  %203 = vmatmul.f32.vlgmr.msra.gmra.mxu3 %v93_v26 }
 0x10a   :  { %223 = vmatmul.f32.vlgmr.msrb.gmra.mxu0 %v93_v26  ;;  %243 = vmatmul.f32.vlgmr.msrb.gmra.mxu1 %v93_v26  ;;  %v293_v26 = vld [vmem:[%s977_s5 + $0x30] sm:$0xff] }
 0x10b   :  { %360 = vmatpush.msrb.mxu2 %v293_v26 }
 0x187   :  { %v224_v29 = vpop.f32.mrf.mxu0  ;;  %v244_v34 = vpop.f32.mrf.mxu1 }
 0x188   :  { %v225_v30 = vadd.f32 %v224_v29, %v161_v28  ;;  %v752_v36 = vadd.f32 %v244_v34, %v162_v32  ;;  %v322_v28 = vld [vmem:[%s977_s5 + $0x118] sm:$0xff]  ;;  %v321_v32 = vld [vmem:[%s977_s5 + $0x110] sm:$0xff]  ;;  %v291_v34 = vld [vmem:[%s977_s5 + $0x20] sm:$0xff] }
 0x189   :  { %v342_v29 = vld [vmem:[%s977_s5 + $0x1b8] sm:$0xff]  ;;  %403 = vmatpush.msra.mxu0 %v322_v28 }
 0x18a   :  { %267 = vmax.xlane.f32.xlu1 %v225_v30  ;;  %419 = vmatpush.msra.mxu1 %v342_v29 }
 0x18b   :  { %404 = vmatpush.msra.mxu0 %v321_v32 }
 0x18c   :  { %v184_v33 = vpop.f32.mrf.mxu2  ;;  %v204_v38 = vpop.f32.mrf.mxu3 }
 0x18d   :  { %v749_v35 = vadd.f32 %v184_v33, %v159_v31  ;;  %v755_v39 = vadd.f32 %v204_v38, %v160_v37  ;;  %v312_v31 = vld [vmem:[%s977_s5 + $0xc8] sm:$0xff]  ;;  %v341_v33 = vld [vmem:[%s977_s5 + $0x1b0] sm:$0xff]  ;;  %v290_v38 = vld [vmem:[%s977_s5 + $0x18] sm:$0xff] }
 0x18e   :  { %377 = vmatpush.msrb.mxu3 %v312_v31  ;;  %420 = vmatpush.msra.mxu1 %v341_v33  ;;  %v340_v37 = vld [vmem:[%s977_s5 + $0x1a8] sm:$0xff] }
 0x18f   :  { %247 = vmax.xlane.f32.xlu0 %v749_v35 }
 0x190   :  { %421 = vmatpush.msra.mxu1 %v340_v37 }
 0x192   :  { %277 = vmax.xlane.f32.xlu1 %v752_v36  ;;  %422 = vmatpush.msra.mxu1 %v339_v41 }
 0x194   :  { %423 = vmatpush.msra.mxu1 %v338_v44 }
 0x196   :  { %424 = vmatpush.msra.mxu1 %v337_v47 }
 0x197   :  { %257 = vmax.xlane.f32.xlu0 %v755_v39 }
 0x198   :  { %425 = vmatpush.msra.mxu1 %v336_v50 }
 0x19a   :  { %426 = vmatpush.msra.mxu1 %v335_v52 }
 0x1fd   :  { %v268_v55 = vpop.xlane.xlu1 %267 }
 0x1fe   :  { %v269_v58 = vsub.f32 %v225_v30, %v268_v55  ;;  %v292_v30 = vld [vmem:[%s977_s5 + $0x28] sm:$0xff]  ;;  %v303_v55 = vld [vmem:[%s977_s5 + $0x80] sm:$0xff] }
 0x1ff   :  { %361 = vmatpush.msrb.mxu2 %v292_v30 }
 0x200   :  { %v270_v62 = vmul.f32 1.442695, %v269_v58 }
 0x201   :  { %362 = vmatpush.msrb.mxu2 %v291_v34 }
 0x202   :  { %440 = vpow2.f32 %v270_v62  ;;  %v248_v2 = vpop.xlane.xlu0 %247 }
 0x203   :  { %v249_v4 = vsub.f32 %v749_v35, %v248_v2  ;;  %v311_v35 = vld [vmem:[%s977_s5 + $0xc0] sm:$0xff]  ;;  %363 = vmatpush.msrb.mxu2 %v290_v38 }
 0x204   :  { %378 = vmatpush.msrb.mxu3 %v311_v35 }
 0x205   :  { %v250_v6 = vmul.f32 1.442695, %v249_v4  ;;  %v278_v7 = vpop.xlane.xlu1 %277  ;;  %364 = vmatpush.msrb.mxu2 %v289_v42 }
 0x206   :  { %v279_v8 = vsub.f32 %v752_v36, %v278_v7  ;;  %v320_v36 = vld [vmem:[%s977_s5 + $0x108] sm:$0xff] }
 0x207   :  { %442 = vpow2.f32 %v250_v6  ;;  %405 = vmatpush.msra.mxu0 %v320_v36  ;;  %365 = vmatpush.msrb.mxu2 %v288_v45 }
 0x208   :  { %v838_v10 = vpop.eup %440  ;;  %v280_v11 = vmul.f32 1.442695, %v279_v8 }
 0x209   :  { %272 = vadd.xlane.f32.xlu0 %v838_v10  ;;  %406 = vmatpush.msra.mxu0 %v319_v40 }
 0x20a   :  { %444 = vpow2.f32 %v280_v11  ;;  %v258_v12 = vpop.xlane.xlu0 %257  ;;  %366 = vmatpush.msrb.mxu2 %v287_v48 }
 0x20b   :  { %v259_v13 = vsub.f32 %v755_v39, %v258_v12  ;;  %v310_v39 = vld [vmem:[%s977_s5 + $0xb8] sm:$0xff] }
 0x20c   :  { %379 = vmatpush.msrb.mxu3 %v310_v39 }
 0x20d   :  { %v842_v14 = vpop.eup %442  ;;  %v260_v15 = vmul.f32 1.442695, %v259_v13 }
 0x20e   :  { %252 = vadd.xlane.f32.xlu2 %v842_v14  ;;  %380 = vmatpush.msrb.mxu3 %v309_v43 }
 0x20f   :  { %446 = vpow2.f32 %v260_v15 }
 0x210   :  { %v845_v16 = vpop.eup %444  ;;  %381 = vmatpush.msrb.mxu3 %v308_v46 }
 0x211   :  { %282 = vadd.xlane.f32.xlu1 %v845_v16 }
 0x212   :  { %382 = vmatpush.msrb.mxu3 %v307_v49 }
 0x214   :  { %383 = vmatpush.msrb.mxu3 %v306_v51 }
 0x215   :  { %v848_v17 = vpop.eup %446 }
 0x216   :  { %262 = vadd.xlane.f32.xlu2 %v848_v17  ;;  %384 = vmatpush.msrb.mxu3 %v305_v53 }
 0x218   :  { %385 = vmatpush.msrb.mxu3 %v304_v54 }
 0x21a   :  { %386 = vmatpush.msrb.mxu3 %v303_v55 }
 0x27c   :  { %v273_v56 = vpop.xlane.xlu0 %272 }
 0x27d   :  { %448 = vrcp.f32 %v273_v56 }
 0x281   :  { %v253_v57 = vpop.xlane.xlu2 %252 }
 0x282   :  { %450 = vrcp.f32 %v253_v57 }
 0x283   :  { %v449_v58 = vpop.eup %448 }
 0x284   :  { %v275_v59 = vmul.f32 %v449_v58, %v838_v10  ;;  %v283_v60 = vpop.xlane.xlu1 %282 }
 0x285   :  { %452 = vrcp.f32 %v283_v60 }
 0x286   :  { %v276_v61 = vmax.f32 %v275_v59, 0.001 }
 0x288   :  { %v451_v62 = vpop.eup %450  ;;  %407 = vmatmul.f32.vlgmr.msra.gmra.mxu0 %v276_v61 }
 0x289   :  { %v263_v63 = vpop.xlane.xlu2 %262  ;;  %v255_v0 = vmul.f32 %v451_v62, %v842_v14 }
 0x28a   :  { %454 = vrcp.f32 %v263_v63 }
 0x28b   :  { %v453_v1 = vpop.eup %452  ;;  %v256_v2 = vmax.f32 %v255_v0, 0.001 }
 0x28c   :  { %v285_v3 = vmul.f32 %v453_v1, %v845_v16 }
 0x28d   :  { %367 = vmatmul.f32.vlgmr.msrb.gmra.mxu2 %v256_v2 }
 0x28e   :  { %v286_v4 = vmax.f32 %v285_v3, 0.001 }
 0x290   :  { %v455_v5 = vpop.eup %454  ;;  %427 = vmatmul.f32.vlgmr.msra.gmra.mxu1 %v286_v4 }
 0x291   :  { %v265_v6 = vmul.f32 %v455_v5, %v848_v17 }
 0x293   :  { %v266_v7 = vmax.f32 %v265_v6, 0.001 }
 0x295   :  { %387 = vmatmul.f32.vlgmr.msrb.gmra.mxu3 %v266_v7 }
 0x305   :  { %v408_v11 = vpop.f32.mrf.mxu0 }
 0x30d   :  { %v428_v13 = vpop.f32.mrf.mxu1 }
 0x310   :  { %v368_v8 = vpop.f32.mrf.mxu2 }
 0x318   :  { %v388_v9 = vpop.f32.mrf.mxu3 }
 0x319   :  { %v389_v10 = vadd.f32 %v388_v9, %v368_v8 }
 0x31b   :  { %v409_v12 = vadd.f32 %v408_v11, %v389_v10 }
 0x31d   :  { %v429_v14 = vadd.f32 %v428_v13, %v409_v12 }
 0x31f   :  { %431 = vst [vmem:[%s978_s6] sm:$0xff] %v429_v14 }

</bundles_post_ra>
